<compile_context>
chip_gen: v7x
topology: tpu7x:2x2x1
jax: 0.10.0
libtpu: 0.0.40
codegen_flags: <defaults>
</compile_context>

<pallas_src>
import jax
import jax.numpy as jnp
from jax.experimental import pallas as pl
from jax.experimental.pallas import tpu as pltpu


def dqn_kernel(x_ref, w1_ref, w2_ref, w3_ref, o_ref, h1_ref, acc_ref):
    j = pl.program_id(1)

    @pl.when(j == 0)
    def _():
        # Layer 1, computed once per batch tile:  h1 = relu(x @ W1)
        xb = x_ref[...].astype(jnp.bfloat16)
        h1 = jnp.dot(xb, w1_ref[...], preferred_element_type=jnp.float32)
        h1_ref[...] = jnp.maximum(h1, 0.0).astype(h1_ref.dtype)
        acc_ref[...] = jnp.zeros_like(acc_ref)

    # Layers 2 + 3, tiled along the hidden dimension (exact because ReLU is
    # elementwise):  acc += relu(h1 @ W2[:, j_slab]) @ W3[j_slab, :]
    h2 = jnp.dot(h1_ref[...], w2_ref[...], preferred_element_type=jnp.float32)
    h2 = jnp.maximum(h2, 0.0).astype(jnp.bfloat16)
    acc_ref[...] += jnp.dot(h2, w3_ref[...], preferred_element_type=jnp.float32)

    @pl.when(j == pl.num_programs(1) - 1)
    def _():
        # Residual add in f32, then cast to output dtype.
        o_ref[...] = (x_ref[...].astype(jnp.float32) + acc_ref[...]).astype(o_ref.dtype)


def dqn_forward(x, w1, w2, w3, *, tb=None, tj=None):
    """x: (B, S) f32; w1: (S, H); w2: (H, H); w3: (H, A) with A == S."""
    B, S = x.shape
    H = w1.shape[1]
    A = w3.shape[1]
    assert A == S, "residual x + fc(x) requires action_dim == state_dim"

    # Batch tile: up to 256 rows, multiple of 8 (sublane), pad B if needed.
    if tb is None:
        tb = min(256, -(-B // 8) * 8)
    assert tb % 8 == 0
    Bp = -(-B // tb) * tb

    # Hidden-dim tile for the W2-columns / W3-rows slabs.
    if tj is None:
        tj = 512 if H % 512 == 0 else H
    assert H % tj == 0
    assert tj == H or tj % 128 == 0

    if Bp != B:
        x_in = jnp.zeros((Bp, S), x.dtype).at[:B].set(x)
    else:
        x_in = x

    grid = (Bp // tb, H // tj)

    out = pl.pallas_call(
        dqn_kernel,
        out_shape=jax.ShapeDtypeStruct((Bp, A), x.dtype),
        grid_spec=pltpu.PrefetchScalarGridSpec(
            num_scalar_prefetch=0,
            grid=grid,
            in_specs=[
                pl.BlockSpec((tb, S), lambda i, j: (i, 0)),   # x tile (resident over j)
                pl.BlockSpec((S, H), lambda i, j: (0, 0)),    # W1 (small, resident)
                pl.BlockSpec((H, tj), lambda i, j: (0, j)),   # W2 column slab
                pl.BlockSpec((tj, A), lambda i, j: (j, 0)),   # W3 row slab
            ],
            out_specs=pl.BlockSpec((tb, A), lambda i, j: (i, 0)),
            scratch_shapes=[
                pltpu.VMEM((tb, H), jnp.bfloat16),   # h1, persists across j
                pltpu.VMEM((tb, A), jnp.float32),    # layer-3 accumulator
            ],
        ),
        compiler_params=pltpu.CompilerParams(
            dimension_semantics=("parallel", "arbitrary"),
            vmem_limit_bytes=64 * 1024 * 1024,
        ),
    )(
        x_in,
        w1.astype(jnp.bfloat16),
        w2.astype(jnp.bfloat16),
        w3.astype(jnp.bfloat16),
    )
    return out[:B] if Bp != B else out


def init_dqn_params(key, state_dim, action_dim, hidden_dim):
    """Deterministic uniform(-0.001, 0.001) init, matching nn.init.uniform_."""
    k1, k2, k3 = jax.random.split(key, 3)
    lo, hi = -0.001, 0.001
    # Stored as (in, out); PyTorch stores (out, in) but forward uses x @ W.T,
    # so this is the same linear map.
    w1 = jax.random.uniform(k1, (state_dim, hidden_dim), jnp.float32, lo, hi)
    w2 = jax.random.uniform(k2, (hidden_dim, hidden_dim), jnp.float32, lo, hi)
    w3 = jax.random.uniform(k3, (hidden_dim, action_dim), jnp.float32, lo, hi)
    return w1, w2, w3


if __name__ == "__main__":
    # Small, TPU-tile-aligned shapes consistent with the module.
    batch = 32
    state_dim = 128
    action_dim = 128      # must equal state_dim for the residual add
    hidden_dim = 512      # module default is 3072; small synthetic size here

    key = jax.random.PRNGKey(0)
    kx, kp = jax.random.split(key)
    x = jax.random.normal(kx, (batch, state_dim), dtype=jnp.float32)
    w1, w2, w3 = init_dqn_params(kp, state_dim, action_dim, hidden_dim)

    # Small tiles here so the test exercises both grid axes (2 batch tiles,
    # 4 hidden slabs); production defaults are tb<=256, tj=512.
    out = dqn_forward(x, w1, w2, w3, tb=16, tj=128)
    out = jax.block_until_ready(out)

    # Reference in plain f32 JAX (kernel uses bf16 operands, f32 accumulate;
    # with uniform(-1e-3,1e-3) weights the fc() term is tiny vs the residual,
    # so a modest tolerance is ample).
    relu = lambda v: jnp.maximum(v, 0.0)
    ref = x + relu(relu(x @ w1) @ w2) @ w3
    assert out.shape == (batch, action_dim)
    assert jnp.allclose(out, ref, atol=1e-3, rtol=1e-2), float(
        jnp.max(jnp.abs(out - ref)))

    print("KERNEL_OK")
</pallas_src>

<mosaic_0001>
module attributes {stable_mosaic.version = 11 : i64} {
  func.func @dqn_kernel(%arg0: i32, %arg1: i32, %arg2: memref<16x128xf32, #tpu.memory_space<vmem>>, %arg3: memref<128x512xbf16, #tpu.memory_space<vmem>>, %arg4: memref<512x128xbf16, #tpu.memory_space<vmem>>, %arg5: memref<128x128xbf16, #tpu.memory_space<vmem>>, %arg6: memref<16x128xf32, #tpu.memory_space<vmem>>, %arg7: memref<16x512xbf16, #tpu.memory_space<vmem>>, %arg8: memref<16x128xf32, #tpu.memory_space<vmem>>) attributes {dimension_semantics = [#tpu.dimension_semantics<parallel>, #tpu.dimension_semantics<arbitrary>], iteration_bounds = array<i64: 2, 4>, scalar_prefetch = 0 : i64, scratch_operands = 2 : i64, tpu.core_type = #tpu.core_type<tc>, window_params = [{transform_indices = @transform_0, window_bounds = array<i64: 16, 128>}, {pipeline_mode = #tpu.pipeline_mode<synchronous>, transform_indices = @transform_1, window_bounds = array<i64: 128, 512>}, {transform_indices = @transform_2, window_bounds = array<i64: 512, 128>}, {transform_indices = @transform_3, window_bounds = array<i64: 128, 128>}, {transform_indices = @transform_4, window_bounds = array<i64: 16, 128>}]} {
    %c0_i32 = arith.constant 0 : i32
    %0 = arith.cmpi eq, %arg1, %c0_i32 : i32
    %1 = arith.extui %0 : i1 to i32
    %c0_i32_0 = arith.constant 0 : i32
    %2 = arith.cmpi ne, %1, %c0_i32_0 : i32
    scf.if %2 {
      %c0_13 = arith.constant 0 : index
      %c0_14 = arith.constant 0 : index
      %17 = vector.load %arg2[%c0_13, %c0_14] : memref<16x128xf32, #tpu.memory_space<vmem>>, vector<16x128xf32>
      %18 = arith.truncf %17 : vector<16x128xf32> to vector<16x128xbf16>
      %c0_15 = arith.constant 0 : index
      %c0_16 = arith.constant 0 : index
      %19 = vector.load %arg3[%c0_15, %c0_16] : memref<128x512xbf16, #tpu.memory_space<vmem>>, vector<128x512xbf16>
      %cst_17 = arith.constant dense<0.000000e+00> : vector<16x512xf32>
      %20 = tpu.matmul %18, %19, %cst_17 {dimension_numbers = #tpu.dot_dimension_numbers<[1], [0], [0], [1], [0, 0, 1, 1], [], []>} : vector<16x128xbf16>, vector<128x512xbf16>, vector<16x512xf32> -> vector<16x512xf32>
      %cst_18 = arith.constant 0.000000e+00 : f32
      %21 = vector.broadcast %cst_18 : f32 to vector<16x512xf32>
      %22 = arith.maximumf %20, %21 : vector<16x512xf32>
      %23 = arith.truncf %22 : vector<16x512xf32> to vector<16x512xbf16>
      %c0_19 = arith.constant 0 : index
      %c0_20 = arith.constant 0 : index
      %24 = vector.load %arg7[%c0_19, %c0_20] : memref<16x512xbf16, #tpu.memory_space<vmem>>, vector<16x512xbf16>
      tpu.vector_store %arg7[%c0_19, %c0_20], %23 {strides = array<i32>} : memref<16x512xbf16, #tpu.memory_space<vmem>>, vector<16x512xbf16>,
      %cst_21 = arith.constant 0.000000e+00 : f32
      %25 = vector.broadcast %cst_21 : f32 to vector<16x128xf32>
      %c0_22 = arith.constant 0 : index
      %c0_23 = arith.constant 0 : index
      %26 = vector.load %arg8[%c0_22, %c0_23] : memref<16x128xf32, #tpu.memory_space<vmem>>, vector<16x128xf32>
      tpu.vector_store %arg8[%c0_22, %c0_23], %25 {strides = array<i32>} : memref<16x128xf32, #tpu.memory_space<vmem>>, vector<16x128xf32>,
    } else {
    }
    %c0 = arith.constant 0 : index
    %c0_1 = arith.constant 0 : index
    %3 = vector.load %arg7[%c0, %c0_1] : memref<16x512xbf16, #tpu.memory_space<vmem>>, vector<16x512xbf16>
    %c0_2 = arith.constant 0 : index
    %c0_3 = arith.constant 0 : index
    %4 = vector.load %arg4[%c0_2, %c0_3] : memref<512x128xbf16, #tpu.memory_space<vmem>>, vector<512x128xbf16>
    %cst = arith.constant dense<0.000000e+00> : vector<16x128xf32>
    %5 = tpu.matmul %3, %4, %cst {dimension_numbers = #tpu.dot_dimension_numbers<[1], [0], [0], [1], [0, 0, 1, 1], [], []>} : vector<16x512xbf16>, vector<512x128xbf16>, vector<16x128xf32> -> vector<16x128xf32>
    %cst_4 = arith.constant 0.000000e+00 : f32
    %6 = vector.broadcast %cst_4 : f32 to vector<16x128xf32>
    %7 = arith.maximumf %5, %6 : vector<16x128xf32>
    %8 = arith.truncf %7 : vector<16x128xf32> to vector<16x128xbf16>
    %c0_5 = arith.constant 0 : index
    %c0_6 = arith.constant 0 : index
    %9 = vector.load %arg8[%c0_5, %c0_6] : memref<16x128xf32, #tpu.memory_space<vmem>>, vector<16x128xf32>
    %c0_7 = arith.constant 0 : index
    %c0_8 = arith.constant 0 : index
    %10 = vector.load %arg5[%c0_7, %c0_8] : memref<128x128xbf16, #tpu.memory_space<vmem>>, vector<128x128xbf16>
    %cst_9 = arith.constant dense<0.000000e+00> : vector<16x128xf32>
    %11 = tpu.matmul %8, %10, %cst_9 {dimension_numbers = #tpu.dot_dimension_numbers<[1], [0], [0], [1], [0, 0, 1, 1], [], []>} : vector<16x128xbf16>, vector<128x128xbf16>, vector<16x128xf32> -> vector<16x128xf32>
    %12 = arith.addf %9, %11 : vector<16x128xf32>
    %c0_10 = arith.constant 0 : index
    %c0_11 = arith.constant 0 : index
    %13 = vector.load %arg8[%c0_10, %c0_11] : memref<16x128xf32, #tpu.memory_space<vmem>>, vector<16x128xf32>
    tpu.vector_store %arg8[%c0_10, %c0_11], %12 {strides = array<i32>} : memref<16x128xf32, #tpu.memory_space<vmem>>, vector<16x128xf32>,
    %c3_i32 = arith.constant 3 : i32
    %14 = arith.cmpi eq, %arg1, %c3_i32 : i32
    %15 = arith.extui %14 : i1 to i32
    %c0_i32_12 = arith.constant 0 : i32
    %16 = arith.cmpi ne, %15, %c0_i32_12 : i32
    scf.if %16 {
      %c0_13 = arith.constant 0 : index
      %c0_14 = arith.constant 0 : index
      %17 = vector.load %arg2[%c0_13, %c0_14] : memref<16x128xf32, #tpu.memory_space<vmem>>, vector<16x128xf32>
      %c0_15 = arith.constant 0 : index
      %c0_16 = arith.constant 0 : index
      %18 = vector.load %arg8[%c0_15, %c0_16] : memref<16x128xf32, #tpu.memory_space<vmem>>, vector<16x128xf32>
      %19 = arith.addf %17, %18 : vector<16x128xf32>
      %c0_17 = arith.constant 0 : index
      %c0_18 = arith.constant 0 : index
      %20 = vector.load %arg6[%c0_17, %c0_18] : memref<16x128xf32, #tpu.memory_space<vmem>>, vector<16x128xf32>
      tpu.vector_store %arg6[%c0_17, %c0_18], %19 {strides = array<i32>} : memref<16x128xf32, #tpu.memory_space<vmem>>, vector<16x128xf32>,
    } else {
    }
    return
  }
  func.func @transform_0(%arg0: i32, %arg1: i32) -> (i32, i32) {
    %c0_i32 = arith.constant 0 : i32
    %c0_i32_0 = arith.constant 0 : i32
    return %arg0, %c0_i32 : i32, i32
  }
  func.func @transform_1(%arg0: i32, %arg1: i32) -> (i32, i32) {
    %c0_i32 = arith.constant 0 : i32
    %c0_i32_0 = arith.constant 0 : i32
    %c0_i32_1 = arith.constant 0 : i32
    return %c0_i32, %c0_i32_0 : i32, i32
  }
  func.func @transform_2(%arg0: i32, %arg1: i32) -> (i32, i32) {
    %c0_i32 = arith.constant 0 : i32
    %c0_i32_0 = arith.constant 0 : i32
    return %c0_i32, %arg1 : i32, i32
  }
  func.func @transform_3(%arg0: i32, %arg1: i32) -> (i32, i32) {
    %c0_i32 = arith.constant 0 : i32
    %c0_i32_0 = arith.constant 0 : i32
    return %arg1, %c0_i32 : i32, i32
  }
  func.func @transform_4(%arg0: i32, %arg1: i32) -> (i32, i32) {
    %c0_i32 = arith.constant 0 : i32
    %c0_i32_0 = arith.constant 0 : i32
    return %arg0, %c0_i32 : i32, i32
  }
}

</mosaic_0001>

<bundles_post_ra>
// kernel: tpu_custom_call.1
= control target key start
LH: loop header
LB: loop body
LE: loop exit
PB: predicated region body
PF: predicated region fallthrough
CT: control target
= control target key end

     0   :  { %s2366_s0 = inlined_call_operand.hbm [shape: f32[32,128], index: 0, kind: input, shape index: {}]   ;;  %s2367_s1 = inlined_call_operand.hbm [shape: bf16[128,512], index: 1, kind: input, shape index: {}]   ;;  %s2368_s2 = inlined_call_operand.hbm [shape: bf16[512,512], index: 2, kind: input, shape index: {}]   ;;  %s2369_s3 = inlined_call_operand.hbm [shape: bf16[512,128], index: 3, kind: input, shape index: {}]   ;;  %s2370_s4 = inlined_call_operand.hbm [shape: f32[32,128], index: 4, kind: output, shape index: {}]  }
   0x1   :  { %2391 = sst [smem:[#allocation24_spill]] %s2366_s0 }
   0x2   :  { %2392 = sst [smem:[#allocation25_spill]] %s2368_s2 }
   0x3   :  { %9 = vsyncpa [#allocation5], 0 }
   0x4   :  { %11 = vsyncpa [#allocation5 + $0x1], 0 }
   0x5   :  { %12 = vsyncpa [#allocation8], 0 }
   0x6   :  { %13 = vsyncpa [#allocation6], 0 }
   0x7   :  { %15 = vsyncpa [#allocation6 + $0x1], 0  ;;  %s1928_s15 = smov 0   ;;  %s1930_s16 = smov 0  }
   0x8   :  { %s1932_s17 = smov 0   ;;  %s1934_s18 = smov 0  }
   0x9   :  { %s1936_s19 = smov 0   ;;  %s1938_s20 = smov 0  }
   0xa   :  { %s1940_s21 = smov 0   ;;  %s1942_s22 = smov 0  }
   0xb   :  { %s1944_s23 = smov 0   ;;  %s1946_s24 = smov 0  }
   0xc   :  { %s1948_s25 = smov 0  }
   0xd LB: > { %2393 = sst [smem:[#allocation16_spill]] %s1852_s17  ;;  %s30_s26 = sadd.s32 1, %s1876_s23  ;;  %s1884_s25 = sphi %s1948_s25, %s21_s25   ;;  %s1880_s24 = sphi %s1946_s24, %s2436_s24   ;;  %s1876_s23 = sphi %s1944_s23, %s2435_s23   ;;  %s1872_s22 = sphi %s1942_s22, %s2434_s22   ;;  %s1868_s21 = sphi %s1940_s21, %s2433_s21   ;;  %s1864_s20 = sphi %s1938_s20, %s2432_s20   ;;  %s1860_s19 = sphi %s1936_s19, %s2440_s19   ;;  %s1856_s18 = sphi %s1934_s18, %s2439_s18   ;;  %s1852_s17 = sphi %s1932_s17, %s2430_s17   ;;  %s1848_s16 = sphi %s1930_s16, %s2438_s16   ;;  %s1844_s15 = sphi %s1928_s15, %s2437_s15  }
   0xe   : > { %2394 = sst [smem:[#allocation17_spill]] %s1864_s20  ;;  %s33_s27 = sadd.s32 1, %s1880_s24 }
   0xf   : > { %2395 = sst [smem:[#allocation18_spill]] %s1876_s23  ;;  %p31_p0 = scmp.ge.s32.totalorder %s30_s26, 4 }
  0x10   : > { %2396 = sst [smem:[#allocation19_spill]] %s1880_s24  ;;  %s40_s28 = sadd.s32 1, %s1864_s20 }
  0x11   : > { %p2372_p1 = scmp.ne.s32.totalorder %s1864_s20, %s1860_s19  ;;  %p2374_p2 = scmp.eq.s32.totalorder %s1884_s25, 0 }
  0x12   : > { %s2442_s26 = smov (%p31_p0, %s30_s26), 0  ;;  %s2444_s27 = smov (!%p31_p0, %s33_s27), %s1880_s24 }
  0x13   : > { %2397 = sst [smem:[#allocation20_spill]] %s2442_s26  ;;  %p1997_p3 = por %p2374_p2, %p2372_p1 }
  0x14   : > { %s84_s30 = ssub.s32 %s1876_s23, %s2442_s26  ;;  %p35_p4 = scmp.ge.s32.totalorder %s2444_s27, 2 }
  0x15   : > { %p2003_p5 = scmp.eq.s32.totalorder %s84_s30, 0  ;;  %p2373_p6 = scmp.lt.s32.totalorder %s1884_s25, 8 }
  0x16   : > { %s2446_s27 = smov (%p35_p4, %s2444_s27), 0  ;;  %s189_s6 = sand.u32 1, %s1884_s25  }
  0x17   : > { %2400 = sst [smem:[#allocation21_spill]] %s2446_s27  ;;  %s191_s7 = sand.u32 1, %s1864_s20  }
  0x18   : > { %s37_s8 = ssub.s32 %s1880_s24, %s2446_s27  ;;  %s1244_s9 = sshll.u32 %s191_s7, 4 }
  0x19   : > { %p38_p7 = scmp.eq.s32.totalorder %s37_s8, 0  ;;  %s1337_s10 = sshll.u32 %s1880_s24, 8 }
  0x1a   : > { %s2402_s0 = sld [smem:[#allocation24_spill]]  ;;  %s193_s30 = scalar_lea.vmem [#allocation4], %s1244_s9 }
  0x1b   : > { %s2016_s11 = scalar_select %p38_p7, %s1864_s20, %s40_s28  }
  0x1c   : > { %s200_s26 = sshll.u32 %s193_s30, 4  ;;  %p2029_p8 = pnand %p2373_p6, %p1997_p3  ;;  %s2023_s26 = int_to_ptr.vmem [resolvable:$true] %s200_s26 }
  0x1d   : > { %2401 = sst [smem:[#allocation22_spill]] %s2016_s11  ;;  %s2033_s28 = scalar_lea.sflag [#allocation5], %s189_s6 }
  0x1e   : > { %p1638_p10 = pneg %p2029_p8 }
  0x20   : > { %s2021_s14 = scalar_lea.hbm %s2402_s0, %s1337_s10  ;;  %s1641_s29 = scalar_lea.hbm %s2402_s0, 512 }
  0x21   : > { %s1636_s8 = scalar_lea.hbm %s2021_s14, 256  ;;  %p1642_p13 = scmp.lt.u32.totalorder %s2021_s14, %s2402_s0 }
  0x22   : > { %p1637_p9 = scmp.ne.s32.totalorder %s2021_s14, %s1636_s8  ;;  %p1643_p0 = scmp.lt.u32.totalorder %s1641_s29, %s1636_s8 }
  0x23   : > { %p1645_p4 = scmp.lt.u32.totalorder %s1636_s8, %s2021_s14 }
  0x24   : > { %p1639_p11 = pnand %p1638_p10, %p1637_p9  ;;  %p1644_p3 = por %p1643_p0, %p1642_p13 }
  0x26   : > { %p1640_p12 = pneg %p1639_p11  ;;  %p1646_p7 = por %p1645_p4, %p1644_p3 }
  0x28   : > { %p1647_p1 = pnand %p1646_p7, %p1640_p12 }
  0x2a   : > { %1650 = shalt.err (!%p1647_p1)
}
  0x2b   : > { %s1651_s6 = scalar_lea.vmem %s2023_s26, 256  ;;  %s1886_s30 = smov [#allocation4]  }
  0x2c   : > { %p1652_p9 = scmp.ne.s32.totalorder %s2023_s26, %s1651_s6  ;;  %s1656_s9 = sshll.u32 %s1886_s30, 4  ;;  %s1657_s9 = int_to_ptr.vmem [resolvable:$false] %s1656_s9 }
  0x2d   : > { %s1658_s10 = scalar_lea.vmem %s1657_s9, 512  ;;  %p1659_p2 = scmp.lt.s32.totalorder %s2023_s26, %s1657_s9 }
  0x2e   : > { %p1654_p11 = pnand %p1652_p9, %p1638_p10  ;;  %p1660_p13 = scmp.lt.s32.totalorder %s1658_s10, %s1651_s6 }
  0x30   : > { %p1655_p6 = pneg %p1654_p11  ;;  %p1661_p0 = por %p1660_p13, %p1659_p2 }
  0x32   : > { %p1662_p3 = pnand %p1661_p0, %p1655_p6 }
  0x34   : > { %1665 = shalt.err (!%p1662_p3)
}
  0x35   : > { %s1887_s8 = smov 128   ;;  %s1888_s29 = smov 8  }
  0x36   : > { %1432 = dma.hbm_to_vmem [thread:$0]  (!%p2029_p8), %s2021_s14, 256, %s2023_s26, %s2033_s28, %s1887_s8, %s1887_s8, %s1888_s29  }
  0x37   : > { %s87_s12 = sadd.s32 1, %s1852_s17  ;;  %p94_p1 = scmp.ne.s32.totalorder %s1852_s17, %s1848_s16 }
  0x38   : > { %s2067_s13 = scalar_select %p2003_p5, %s1852_s17, %s87_s12  }
  0x39   : > { %p2405_p2 = scmp.eq.s32.totalorder %s1884_s25, 0  ;;  %s212_s6 = sand.u32 1, %s1852_s17  }
  0x3a   : > { %2404 = sst [smem:[#allocation23_spill]] %s2067_s13  ;;  %s1247_s30 = sshll.u32 %s212_s6, 8 }
  0x3b   : > { %p96_p6 = por %p94_p1, %p2405_p2  ;;  %s1248_s9 = sshll.u32 %s1876_s23, 6 }
  0x3c   : > { %s2406_s2 = sld [smem:[#allocation25_spill]]  ;;  %s214_s26 = scalar_lea.vmem [#allocation9], %s1247_s30 }
  0x3d   : > { %s220_s14 = sshll.u32 %s214_s26, 4  ;;  %p2407_p8 = scmp.lt.s32.totalorder %s1884_s25, 8  ;;  %s2086_s14 = int_to_ptr.vmem [resolvable:$true] %s220_s14 }
  0x3f   : > { %p2082_p5 = pnand %p2407_p8, %p96_p6 }
  0x41   : > { %s2408_s5 = scalar_select %p2082_p5, 1, 0 }
  0x42   : > { %s2078_s27 = scalar_lea.hbm %s2406_s2, %s1248_s9  ;;  %p2376_p12 = pneg %p2082_p5 }
  0x43   : > { %s1666_s7 = scalar_lea.hbm %s2078_s27, 4096  ;;  %s1671_s29 = scalar_lea.hbm %s2406_s2, 16384 }
  0x44   : > { %p1667_p10 = scmp.ne.s32.totalorder %s2078_s27, %s1666_s7  ;;  %p1672_p9 = scmp.lt.u32.totalorder %s2078_s27, %s2406_s2 }
  0x45   : > { %p1673_p11 = scmp.lt.u32.totalorder %s1671_s29, %s1666_s7  ;;  %p1675_p0 = scmp.lt.u32.totalorder %s1666_s7, %s2078_s27 }
  0x46   : > { %p1669_p4 = pnand %p2376_p12, %p1667_p10 }
  0x47   : > { %p1674_p13 = por %p1673_p11, %p1672_p9 }
  0x48   : > { %p1670_p7 = pneg %p1669_p4 }
  0x49   : > { %p1676_p3 = por %p1675_p0, %p1674_p13 }
  0x4b   : > { %p1677_p1 = pnand %p1676_p3, %p1670_p7 }
  0x4d   : > { %1680 = shalt.err (!%p1677_p1)
}
  0x4e   : > { %s1681_s9 = scalar_lea.vmem %s2086_s14, 4096  ;;  %s1889_s10 = smov [#allocation9]  }
  0x4f   : > { %p1682_p2 = scmp.ne.s32.totalorder %s2086_s14, %s1681_s9  ;;  %s1686_s26 = sshll.u32 %s1889_s10, 4  ;;  %s1687_s26 = int_to_ptr.vmem [resolvable:$false] %s1686_s26 }
  0x50   : > { %s1688_s0 = scalar_lea.vmem %s1687_s26, 8192  ;;  %p1689_p10 = scmp.lt.s32.totalorder %s2086_s14, %s1687_s26 }
  0x51   : > { %p1684_p6 = pnand %p1682_p2, %p2376_p12  ;;  %p1690_p4 = scmp.lt.s32.totalorder %s1688_s0, %s1681_s9 }
  0x53   : > { %p1685_p8 = pneg %p1684_p6  ;;  %p1691_p9 = por %p1690_p4, %p1689_p10 }
  0x55   : > { %p1692_p11 = pnand %p1691_p9, %p1685_p8 }
  0x57   : > { %1695 = shalt.err (!%p1692_p11)
}
  0x58   : > { %s2379_s7 = smov 256   ;;  %s2377_s8 = smov 64  }
  0x59   : > { %s2378_s29 = smov 4   ;;  %s2118_s12 = sadd.s32 4294967295, %s1884_s25  }
  0x5a   : > { %1435 = dma.hbm_to_vmem [thread:$0]  (!%p2082_p5), %s2078_s27, 4096, %s2086_s14, %s2033_s28, %s2379_s7, %s2377_s8, %s2378_s29  }
  0x5b   : > { %s1240_s30 = sadd.s32 4294967294, %s1884_s25   ;;  %p53_p7 = scmp.ne.s32.totalorder %s1860_s19, %s1856_s18 }
  0x5c   : > { %p2384_p13 = scmp.eq.s32.totalorder %s2118_s12, 0  ;;  %p100_p0 = scmp.ne.s32.totalorder %s1848_s16, %s1844_s15 }
  0x5d   : > { %p150_p3 = scmp.eq.s32.totalorder %s2118_s12, 7  ;;  %p156_p2 = scmp.eq.s32.totalorder %s1240_s30, 7 }
  0x5e   : > { %p2129_p1 = por %p2384_p13, %p53_p7  ;;  %p2135_p6 = por %p100_p0, %p2384_p13 }
  0x5f   : > { %p2411_p8 = scmp.ne.s32.totalorder %s1864_s20, %s1860_s19  ;;  %p2146_p4 = por %p156_p2, %p53_p7 }
  0x60   : > { %s2409_s9 = scalar_select %p2129_p1, 1, 0 }
  0x61   : > { %s2410_s27 = scalar_select %p2135_p6, 1, 0 }
  0x62   : > { %p2142_p10 = por %p150_p3, %p2411_p8  ;;  %p1241_p9 = scmp.ge.s32.totalorder %s1884_s25, 1 }
  0x63   : > { %s2413_s15 = scalar_select %p2146_p4, 1, 0 }
  0x64   : > { %s2412_s14 = scalar_select %p2142_p10, 1, 0 }
  0x65   : > { %p163_p11 = scmp.lt.s32.totalorder %s1884_s25, 9  ;;  %s1893_s26 = smov [#allocation7]  }
  0x66   : > { %s175_s0 = sshll.u32 %s1893_s26, 4  ;;  %s1249_s30 = sshll.u32 %s212_s6, 6  ;;  %s176_s0 = int_to_ptr.vmem [resolvable:$true] %s175_s0 }
  0x67   : > { %p2152_p12 = pnand %p1241_p9, %p163_p11  ;;  %s1338_s8 = sshll.u32 %s1876_s23, 10 }
  0x68   : > { %s234_s29 = scalar_lea.vmem [#allocation10], %s1249_s30  ;;  %s2170_s20 = scalar_lea.hbm %s2369_s3, %s1338_s8 }
  0x69   : > { %s2414_s10 = scalar_select %p2152_p12, 1, 0 }
  0x6a   : > { %p1425_p0 = pneg %p2152_p12  ;;  %s241_s7 = sshll.u32 %s234_s29, 4  ;;  %s2172_s7 = int_to_ptr.vmem [resolvable:$true] %s241_s7 }
  0x6b   : > { %s1696_s23 = scalar_lea.hbm %s2367_s1, 4096 }
  0x6c   : > { %p2163_p7 = pnand %p1425_p0, %p2384_p13  ;;  %p1697_p3 = scmp.ne.s32.totalorder %s2367_s1, %s1696_s23 }
  0x6d   : > { %p1703_p11 = scmp.lt.u32.totalorder %s1696_s23, %s2367_s1 }
  0x6e   : > { %p1698_p2 = pneg %p2163_p7 }
  0x70   : > { %p1699_p8 = pnand %p1698_p2, %p1697_p3 }
  0x72   : > { %p1700_p9 = pneg %p1699_p8 }
  0x74   : > { %p1705_p0 = pnand %p1703_p11, %p1700_p9 }
  0x76   : > { %1708 = shalt.err (!%p1705_p0)
}
  0x77   : > { %s1709_s24 = scalar_lea.vmem %s176_s0, 4096  ;;  %p1717_p6 = scmp.lt.s32.totalorder %s176_s0, %s176_s0 }
  0x78   : > { %p1710_p13 = scmp.ne.s32.totalorder %s176_s0, %s1709_s24  ;;  %p1718_p1 = scmp.lt.s32.totalorder %s1709_s24, %s1709_s24 }
  0x7a   : > { %p1712_p4 = pnand %p1710_p13, %p1698_p2  ;;  %p1719_p12 = por %p1718_p1, %p1717_p6 }
  0x7c   : > { %p1713_p10 = pneg %p1712_p4 }
  0x7e   : > { %p1720_p5 = pnand %p1719_p12, %p1713_p10 }
  0x80   : > { %1723 = shalt.err (!%p1720_p5)
}
  0x81   : > { %s1894_s11 = smov 16   ;;  %s2416_s8 = smov 256  }
  0x82   : > { %1428 = dma.hbm_to_vmem [thread:$0]  (!%p2163_p7), %s2367_s1, 4096, %s176_s0, [#allocation8], %s2416_s8, %s2416_s8, %s1894_s11  }
  0x83   : > { %s1724_s17 = scalar_lea.hbm %s2170_s20, 1024  ;;  %p2417_p4 = scmp.ne.s32.totalorder %s2408_s5, 0 }
  0x84   : > { %p1725_p13 = scmp.ne.s32.totalorder %s2170_s20, %s1724_s17  ;;  %s1729_s2 = scalar_lea.hbm %s2369_s3, 4096 }
  0x85   : > { %p2418_p1 = pneg %p2417_p4  ;;  %p1730_p6 = scmp.lt.u32.totalorder %s2170_s20, %s2369_s3 }
  0x86   : > { %p1731_p10 = scmp.lt.u32.totalorder %s1729_s2, %s1724_s17  ;;  %p1733_p2 = scmp.lt.u32.totalorder %s1724_s17, %s2170_s20 }
  0x87   : > { %p1727_p12 = pnand %p1725_p13, %p2418_p1 }
  0x88   : > { %p1732_p3 = por %p1731_p10, %p1730_p6 }
  0x89   : > { %p1728_p5 = pneg %p1727_p12 }
  0x8a   : > { %p1734_p8 = por %p1733_p2, %p1732_p3 }
  0x8c   : > { %p1735_p9 = pnand %p1734_p8, %p1728_p5 }
  0x8e   : > { %1738 = shalt.err (!%p1735_p9)
}
  0x8f   : > { %s1739_s0 = scalar_lea.vmem %s2172_s7, 1024  ;;  %p2419_p11 = pmov %p2418_p1 }
  0x90   : > { %p1740_p7 = scmp.ne.s32.totalorder %s2172_s7, %s1739_s0  ;;  %s1895_s24 = smov [#allocation10]  }
  0x91   : > { %s1744_s11 = sshll.u32 %s1895_s24, 4  ;;  %s1745_s11 = int_to_ptr.vmem [resolvable:$false] %s1744_s11 }
  0x92   : > { %p1742_p0 = pnand %p1740_p7, %p2419_p11  ;;  %s1746_s8 = scalar_lea.vmem %s1745_s11, 2048 }
  0x93   : > { %p1747_p1 = scmp.lt.s32.totalorder %s2172_s7, %s1745_s11  ;;  %p1748_p12 = scmp.lt.s32.totalorder %s1746_s8, %s1739_s0 }
  0x94   : > { %p1743_p13 = pneg %p1742_p0 }
  0x95   : > { %p1749_p6 = por %p1748_p12, %p1747_p1 }
  0x97   : > { %p1750_p10 = pnand %p1749_p6, %p1743_p13 }
  0x99   : > { %1753 = shalt.err (!%p1750_p10)
}
  0x9a   : > { %s2420_s6 = smov 4   ;;  %s2421_s26 = smov 64  }
  0x9b   : > { %1438 = dma.hbm_to_vmem [thread:$0]  (!%p2417_p4), %s2170_s20, 1024, %s2172_s7, %s2033_s28, %s2421_s26, %s2421_s26, %s2420_s6  }
  0x9c   : > { %p2422_p5 = scmp.ne.s32.totalorder %s2414_s10, 0 }
  0x9d   : > { %s255_s17 = sand.u32 (!%p2422_p5), 1, %s2118_s12   ;;  %s257_s23 = sand.u32 (!%p2422_p5), 1, %s1860_s19  }
  0x9e   : > { %253 = sbr.rel (%p2422_p5) target bundleno = 940 (0x3ac), region = 36  ;;  %s1253_s13 = sshll.u32 (!%p2422_p5), %s257_s23, 4 }
  0x9f   : > { %s256_s2 = scalar_lea.sflag (!%p2422_p5), [#allocation5], %s255_s17  ;;  %s2225_s5 = scalar_lea.vmem (!%p2422_p5), [#allocation4], %s1253_s13 }
  0xa0   : > { %p2423_p3 = scmp.ne.s32.totalorder (!%p2422_p5), %s2409_s9, 0 }
  0xa5   : > { %1827 = dma.done.wait (%p2423_p3), %s256_s2, 256  }
  0xa6   : > { %1829 = vsyncadd (%p2423_p3), %s256_s2, 4294967040  ;;  %p2424_p4 = scmp.eq.s32.totalorder %s2118_s12, 0 }
  0xa8   : > { %1831 = dma.done.wait (%p2424_p4), [#allocation8], 4096   ;;  %p2425_p2 = pmov %p2424_p4 }
  0xa9   : > { %s270_s20 = sand.u32 1, %s1848_s16   ;;  %p2426_p8 = scmp.ne.s32.totalorder %s2410_s27, 0 }
  0xaa   : > { %1833 = vsyncadd (%p2425_p2), [#allocation8], 4294963200  ;;  %s1255_s28 = sshll.u32 %s270_s20, 8 }
  0xab   : > { %s2236_s7 = scalar_lea.vmem [#allocation9], %s1255_s28 }
  0xac   : > { %1835 = dma.done.wait (%p2426_p8), %s256_s2, 5120  }
  0xad   : > { %1837 = vsyncadd (%p2426_p8), %s256_s2, 4294962176  ;;  %s1256_s10 = sshll.u32 %s270_s20, 6  ;;  %s2244_s30 = scalar_lea.vmem [#allocation11], %s1253_s13 }
  0xae   : > { %s2242_s9 = scalar_lea.vmem [#allocation10], %s1256_s10  ;;  %p1258_p9 = scmp.ne.s32.totalorder %s1868_s21, 0 }
  0xaf   : > { %v1548_v0 = vld [vmem:[#allocation7 + $0x4] ss:$16 sps:$4 sm:$0xff] (!%p1258_p9)   ;;  %v1550_v1 = vld [vmem:[#allocation7 + $0xc] ss:$16 sps:$4 sm:$0xff] (!%p1258_p9)   ;;  %v1896_v2 = vmov (!%p1258_p9), 0   ;;  %v1897_v36 = vmov (!%p1258_p9), 0.0  }
  0xb0   : > { %323 = sbr.rel (%p1258_p9) target bundleno = 429 (0x1ad), region = 56  ;;  %551 = vmatprep.mubr.bf16.mxu0 (!%p1258_p9), %v1896_v2  ;;  %594 = vmatprep.mubr.bf16.mxu1 (!%p1258_p9), %v1896_v2  ;;  %v1552_v3 = vld [vmem:[#allocation7] ss:$16 sps:$4 sm:$0xff] (!%p1258_p9)   ;;  %v1553_v4 = vld [vmem:[#allocation7 + $0x8] ss:$16 sps:$4 sm:$0xff] (!%p1258_p9)   ;;  %621 = vst [vmem:[#allocation3] sm:$0xff] (!%p1258_p9), %v1897_v36 }
  0xb1   : > { %519 = vmatprep.subr.bf16.mxu0 (!%p1258_p9), %v1548_v0  ;;  %562 = vmatprep.subr.bf16.mxu1 (!%p1258_p9), %v1550_v1  ;;  %v1554_v5 = vld [vmem:[#allocation7 + $0x24] ss:$16 sps:$4 sm:$0xff] (!%p1258_p9)   ;;  %v1556_v6 = vld [vmem:[#allocation7 + $0x2c] ss:$16 sps:$4 sm:$0xff] (!%p1258_p9)   ;;  %v1558_v7 = vld [vmem:[#allocation7 + $0x20] ss:$16 sps:$4 sm:$0xff] (!%p1258_p9)  }
  0xb2   : > { %520 = vmatpush1.bf16.msra.mxu0 (!%p1258_p9), %v1552_v3  ;;  %563 = vmatpush1.bf16.msra.mxu1 (!%p1258_p9), %v1553_v4  ;;  %v1559_v8 = vld [vmem:[#allocation7 + $0x28] ss:$16 sps:$4 sm:$0xff] (!%p1258_p9)   ;;  %v1560_v9 = vld [vmem:[#allocation7 + $0x44] ss:$16 sps:$4 sm:$0xff] (!%p1258_p9)   ;;  %v1562_v10 = vld [vmem:[#allocation7 + $0x4c] ss:$16 sps:$4 sm:$0xff] (!%p1258_p9)  }
  0xb3   : > { %521 = vmatprep.subr.bf16.mxu0 (!%p1258_p9), %v1554_v5  ;;  %564 = vmatprep.subr.bf16.mxu1 (!%p1258_p9), %v1556_v6  ;;  %v1564_v11 = vld [vmem:[#allocation7 + $0x40] ss:$16 sps:$4 sm:$0xff] (!%p1258_p9)   ;;  %v1565_v12 = vld [vmem:[#allocation7 + $0x48] ss:$16 sps:$4 sm:$0xff] (!%p1258_p9)   ;;  %v1566_v13 = vld [vmem:[#allocation7 + $0x64] ss:$16 sps:$4 sm:$0xff] (!%p1258_p9)  }
  0xb4   : > { %v1568_v14 = vld [vmem:[#allocation7 + $0x6c] ss:$16 sps:$4 sm:$0xff] (!%p1258_p9)   ;;  %v1570_v15 = vld [vmem:[#allocation7 + $0x60] ss:$16 sps:$4 sm:$0xff] (!%p1258_p9)   ;;  %v1571_v16 = vld [vmem:[#allocation7 + $0x68] ss:$16 sps:$4 sm:$0xff] (!%p1258_p9)  }
  0xb5   : > { %v1572_v17 = vld [vmem:[#allocation7 + $0x84] ss:$16 sps:$4 sm:$0xff] (!%p1258_p9)   ;;  %v1574_v18 = vld [vmem:[#allocation7 + $0x8c] ss:$16 sps:$4 sm:$0xff] (!%p1258_p9)   ;;  %v1576_v19 = vld [vmem:[#allocation7 + $0x80] ss:$16 sps:$4 sm:$0xff] (!%p1258_p9)  }
  0xb6   : > { %522 = vmatpush1.bf16.msra.mxu0 (!%p1258_p9), %v1558_v7  ;;  %565 = vmatpush1.bf16.msra.mxu1 (!%p1258_p9), %v1559_v8  ;;  %v1577_v20 = vld [vmem:[#allocation7 + $0x88] ss:$16 sps:$4 sm:$0xff] (!%p1258_p9)   ;;  %v1578_v21 = vld [vmem:[#allocation7 + $0xa4] ss:$16 sps:$4 sm:$0xff] (!%p1258_p9)   ;;  %v1580_v22 = vld [vmem:[#allocation7 + $0xac] ss:$16 sps:$4 sm:$0xff] (!%p1258_p9)  }
  0xb7   : > { %523 = vmatprep.subr.bf16.mxu0 %v1560_v9  ;;  %566 = vmatprep.subr.bf16.mxu1 %v1562_v10  ;;  %v1582_v23 = vld [vmem:[#allocation7 + $0xa0] ss:$16 sps:$4 sm:$0xff]   ;;  %v1583_v24 = vld [vmem:[#allocation7 + $0xa8] ss:$16 sps:$4 sm:$0xff]   ;;  %v1584_v25 = vld [vmem:[#allocation7 + $0xc4] ss:$16 sps:$4 sm:$0xff]  }
  0xb8   : > { %v1586_v26 = vld [vmem:[#allocation7 + $0xcc] ss:$16 sps:$4 sm:$0xff]   ;;  %v1588_v27 = vld [vmem:[#allocation7 + $0xc0] ss:$16 sps:$4 sm:$0xff]   ;;  %v1589_v28 = vld [vmem:[#allocation7 + $0xc8] ss:$16 sps:$4 sm:$0xff]  }
  0xb9   : > { %v1590_v29 = vld [vmem:[#allocation7 + $0xe4] ss:$16 sps:$4 sm:$0xff]   ;;  %v1592_v30 = vld [vmem:[#allocation7 + $0xec] ss:$16 sps:$4 sm:$0xff]   ;;  %v1594_v31 = vld [vmem:[#allocation7 + $0xe0] ss:$16 sps:$4 sm:$0xff]  }
  0xba   : > { %524 = vmatpush1.bf16.msra.mxu0 %v1564_v11  ;;  %567 = vmatpush1.bf16.msra.mxu1 %v1565_v12  ;;  %v1595_v32 = vld [vmem:[#allocation7 + $0xe8] ss:$16 sps:$4 sm:$0xff]   ;;  %v324_v33 = vld [vmem:[%s2225_s5] sm:$0xff]  ;;  %622 = vst [vmem:[#allocation3 + $0x8] sm:$0xff] %v1897_v36 }
  0xbb   : > { %525 = vmatprep.subr.bf16.mxu0 %v1566_v13  ;;  %568 = vmatprep.subr.bf16.mxu1 %v1568_v14  ;;  %v325_v34 = vld [vmem:[%s2225_s5 + $0x8] sm:$0xff] }
  0xbc   : > { %v326_v35 = vpack.c.bf16 %v325_v34, %v324_v33 }
  0xbe   : > { %526 = vmatpush1.bf16.msra.mxu0 %v1570_v15  ;;  %569 = vmatpush1.bf16.msra.mxu1 %v1571_v16 }
  0xbf   : > { %527 = vmatprep.subr.bf16.mxu0 %v1572_v17  ;;  %570 = vmatprep.subr.bf16.mxu1 %v1574_v18 }
  0xc2   : > { %528 = vmatpush1.bf16.msra.mxu0 %v1576_v19  ;;  %571 = vmatpush1.bf16.msra.mxu1 %v1577_v20 }
  0xc3   : > { %529 = vmatprep.subr.bf16.mxu0 %v1578_v21  ;;  %572 = vmatprep.subr.bf16.mxu1 %v1580_v22 }
  0xc6   : > { %530 = vmatpush1.bf16.msra.mxu0 %v1582_v23  ;;  %573 = vmatpush1.bf16.msra.mxu1 %v1583_v24 }
  0xc7   : > { %531 = vmatprep.subr.bf16.mxu0 %v1584_v25  ;;  %574 = vmatprep.subr.bf16.mxu1 %v1586_v26 }
  0xca   : > { %532 = vmatpush1.bf16.msra.mxu0 %v1588_v27  ;;  %575 = vmatpush1.bf16.msra.mxu1 %v1589_v28 }
  0xcb   : > { %533 = vmatprep.subr.bf16.mxu0 %v1590_v29  ;;  %576 = vmatprep.subr.bf16.mxu1 %v1592_v30 }
  0xce   : > { %534 = vmatpush1.bf16.msra.mxu0 %v1594_v31  ;;  %577 = vmatpush1.bf16.msra.mxu1 %v1595_v32 }
  0xd1   : > { %552 = vmatmul.mubr.bf16.vlgmr.msra.gmra.mrb[0].mxu0 %v326_v35  ;;  %595 = vmatmul.mubr.bf16.vlgmr.msra.gmra.mrb[0].mxu1 %v326_v35 }
 0x1a4   : > { %v553_v37 = vpop.f32.mrb[0].mxu0  ;;  %v596_v38 = vpop.f32.mrb[0].mxu1 }
 0x1a5   : > { %v555_v39 = vpop.f32.mrb[1].mxu0  ;;  %v598_v40 = vpop.f32.mrb[1].mxu1  ;;  %v605_v43 = vmax.f32 %v553_v37, 0.0  ;;  %v607_v44 = vmax.f32 %v596_v38, 0.0 }
 0x1a6   : > { %v557_v41 = vpop.f32.mrb[2].mxu0  ;;  %v600_v42 = vpop.f32.mrb[2].mxu1  ;;  %v606_v49 = vmax.f32 %v555_v39, 0.0  ;;  %v608_v50 = vmax.f32 %v598_v40, 0.0 }
 0x1a7   : > { %v609_v45 = vmax.f32 %v557_v41, 0.0  ;;  %v611_v46 = vmax.f32 %v600_v42, 0.0  ;;  %v559_v47 = vpop.f32.mrb[3].mxu0  ;;  %v602_v48 = vpop.f32.mrb[3].mxu1 }
 0x1a8   : > { %v610_v51 = vmax.f32 %v559_v47, 0.0  ;;  %v612_v52 = vmax.f32 %v602_v48, 0.0 }
 0x1a9   : > { %v613_v53 = vpack.c.bf16 %v609_v45, %v605_v43  ;;  %v615_v54 = vpack.c.bf16 %v611_v46, %v607_v44 }
 0x1aa   : > { %v614_v55 = vpack.c.bf16 %v610_v51, %v606_v49  ;;  %v616_v56 = vpack.c.bf16 %v612_v52, %v608_v50 }
 0x1ab   : > { %617 = vst [vmem:[#allocation2] sm:$0xff] %v613_v53  ;;  %619 = vst [vmem:[#allocation2 + $0x10] sm:$0xff] %v615_v54 }
 0x1ac   : > { %618 = vst [vmem:[#allocation2 + $0x8] sm:$0xff] %v614_v55  ;;  %620 = vst [vmem:[#allocation2 + $0x18] sm:$0xff] %v616_v56 }
 0x1ad PF: > { %v1596_v57 = vld [vmem:[%s2236_s7 + $0x40] sm:$0xff]   ;;  %v1600_v61 = vld [vmem:[%s2236_s7 + $0x48] sm:$0xff]   ;;  %v1604_v1 = vld [vmem:[%s2236_s7 + $0x50] sm:$0xff]   ;;  %v1898_v29 = vmov 0.0   ;;  %vm1899_vm0 = vmmov 0   ;;  %p1331_p7 = scmp.ne.s32.totalorder %s1868_s21, 3 }
 0x1ae   : > { %v1597_v58 = vld [vmem:[%s2236_s7 + $0xc0] sm:$0xff]   ;;  %1340 = vmatprep.subr.bf16.mxu0 %v1596_v57  ;;  %v1601_v62 = vld [vmem:[%s2236_s7 + $0xc8] sm:$0xff]   ;;  %v1605_v2 = vld [vmem:[%s2236_s7 + $0xd0] sm:$0xff]  }
 0x1af   : > { %v1598_v59 = vld [vmem:[%s2236_s7] sm:$0xff]   ;;  %1362 = vmatprep.subr.bf16.mxu1 %v1597_v58  ;;  %v1602_v63 = vld [vmem:[%s2236_s7 + $0x8] sm:$0xff]   ;;  %v1606_v3 = vld [vmem:[%s2236_s7 + $0x10] sm:$0xff]  }
 0x1b0   : > { %v1599_v60 = vld [vmem:[%s2236_s7 + $0x80] sm:$0xff]   ;;  %1341 = vmatpush3.bf16.msra.mxu0 %v1598_v59  ;;  %v1603_v0 = vld [vmem:[%s2236_s7 + $0x88] sm:$0xff]   ;;  %v1607_v4 = vld [vmem:[%s2236_s7 + $0x90] sm:$0xff]  }
 0x1b1   : > { %1363 = vmatpush3.bf16.msra.mxu1 %v1599_v60  ;;  %1342 = vmatprep.subr.bf16.mxu0 %v1600_v61  ;;  %v1608_v5 = vld [vmem:[%s2236_s7 + $0x58] sm:$0xff]   ;;  %v1612_v9 = vld [vmem:[%s2236_s7 + $0x60] sm:$0xff]   ;;  %v1616_v13 = vld [vmem:[%s2236_s7 + $0x68] sm:$0xff]  }
 0x1b2   : > { %1364 = vmatprep.subr.bf16.mxu1 %v1601_v62  ;;  %v1609_v6 = vld [vmem:[%s2236_s7 + $0xd8] sm:$0xff]   ;;  %v1613_v10 = vld [vmem:[%s2236_s7 + $0xe0] sm:$0xff]   ;;  %v1617_v14 = vld [vmem:[%s2236_s7 + $0xe8] sm:$0xff]  }
 0x1b3   : > { %v1610_v7 = vld [vmem:[%s2236_s7 + $0x18] sm:$0xff]   ;;  %v1614_v11 = vld [vmem:[%s2236_s7 + $0x20] sm:$0xff]   ;;  %v1618_v15 = vld [vmem:[%s2236_s7 + $0x28] sm:$0xff]  }
 0x1b4   : > { %1343 = vmatpush3.bf16.msra.mxu0 %v1602_v63  ;;  %v1611_v8 = vld [vmem:[%s2236_s7 + $0x98] sm:$0xff]   ;;  %v1615_v12 = vld [vmem:[%s2236_s7 + $0xa0] sm:$0xff]   ;;  %v1619_v16 = vld [vmem:[%s2236_s7 + $0xa8] sm:$0xff]  }
 0x1b5   : > { %1365 = vmatpush3.bf16.msra.mxu1 %v1603_v0  ;;  %1344 = vmatprep.subr.bf16.mxu0 %v1604_v1  ;;  %v1620_v17 = vld [vmem:[%s2236_s7 + $0x70] sm:$0xff]   ;;  %v1624_v21 = vld [vmem:[%s2236_s7 + $0x78] sm:$0xff]   ;;  %v626_v26 = vld [vmem:[#allocation2 + $0x18] sm:$0xff] }
 0x1b6   : > { %1366 = vmatprep.subr.bf16.mxu1 %v1605_v2  ;;  %v1621_v18 = vld [vmem:[%s2236_s7 + $0xf0] sm:$0xff]   ;;  %v1625_v22 = vld [vmem:[%s2236_s7 + $0xf8] sm:$0xff]   ;;  %v625_v28 = vld [vmem:[#allocation2 + $0x10] sm:$0xff]  ;;  %956 = vmatprep.mubr.bf16.mxu1 %v626_v26 }
 0x1b7   : > { %v1622_v19 = vld [vmem:[%s2236_s7 + $0x30] sm:$0xff]   ;;  %v1626_v23 = vld [vmem:[%s2236_s7 + $0x38] sm:$0xff]   ;;  %v1628_v30 = vld [vmem:[%s2242_s9] sm:$0xff]  }
 0x1b8   : > { %1345 = vmatpush3.bf16.msra.mxu0 %v1606_v3  ;;  %v1623_v20 = vld [vmem:[%s2236_s7 + $0xb0] sm:$0xff]   ;;  %v1627_v24 = vld [vmem:[%s2236_s7 + $0xb8] sm:$0xff]   ;;  %v1629_v31 = vld [vmem:[%s2242_s9 + $0x8] sm:$0xff]  }
 0x1b9   : > { %1367 = vmatpush3.bf16.msra.mxu1 %v1607_v4  ;;  %1346 = vmatprep.subr.bf16.mxu0 %v1608_v5  ;;  %v624_v25 = vld [vmem:[#allocation2 + $0x8] sm:$0xff]  ;;  %v623_v27 = vld [vmem:[#allocation2] sm:$0xff]  ;;  %v1632_v34 = vld [vmem:[%s2242_s9 + $0x20] sm:$0xff]  }
 0x1ba   : > { %1368 = vmatprep.subr.bf16.mxu1 %v1609_v6  ;;  %915 = vmatprep.mubr.bf16.mxu0 %v624_v25  ;;  %v1630_v32 = vld [vmem:[%s2242_s9 + $0x10] sm:$0xff]   ;;  %v1631_v33 = vld [vmem:[%s2242_s9 + $0x18] sm:$0xff]   ;;  %v1633_v35 = vld [vmem:[%s2242_s9 + $0x28] sm:$0xff]  }
 0x1bb   : > { %v1634_v36 = vld [vmem:[%s2242_s9 + $0x30] sm:$0xff]   ;;  %v1635_v37 = vld [vmem:[%s2242_s9 + $0x38] sm:$0xff]  }
 0x1bc   : > { %1347 = vmatpush3.bf16.msra.mxu0 %v1610_v7  ;;  %v968_v55 = vld [vmem:[#allocation3] sm:$0xff]  ;;  %v969_v57 = vld [vmem:[#allocation3 + $0x8] sm:$0xff] }
 0x1bd   : > { %1369 = vmatpush3.bf16.msra.mxu1 %v1611_v8  ;;  %1348 = vmatprep.subr.bf16.mxu0 %v1612_v9  ;;  %v1083_v63 = vld [vmem:[%s2225_s5] sm:$0xff] (!%p1331_p7)  ;;  %v1084_v1 = vld [vmem:[%s2225_s5 + $0x8] sm:$0xff] (!%p1331_p7) }
 0x1be   : > { %1370 = vmatprep.subr.bf16.mxu1 %v1613_v10 }
 0x1c0   : > { %1349 = vmatpush3.bf16.msra.mxu0 %v1614_v11 }
 0x1c1   : > { %1371 = vmatpush3.bf16.msra.mxu1 %v1615_v12  ;;  %1350 = vmatprep.subr.bf16.mxu0 %v1616_v13 }
 0x1c2   : > { %1372 = vmatprep.subr.bf16.mxu1 %v1617_v14 }
 0x1c4   : > { %1351 = vmatpush3.bf16.msra.mxu0 %v1618_v15 }
 0x1c5   : > { %1373 = vmatpush3.bf16.msra.mxu1 %v1619_v16  ;;  %1352 = vmatprep.subr.bf16.mxu0 %v1620_v17 }
 0x1c6   : > { %1374 = vmatprep.subr.bf16.mxu1 %v1621_v18 }
 0x1c8   : > { %1353 = vmatpush3.bf16.msra.mxu0 %v1622_v19 }
 0x1c9   : > { %1375 = vmatpush3.bf16.msra.mxu1 %v1623_v20  ;;  %1354 = vmatprep.subr.bf16.mxu0 %v1624_v21 }
 0x1ca   : > { %1376 = vmatprep.subr.bf16.mxu1 %v1625_v22 }
 0x1cc   : > { %1355 = vmatpush3.bf16.msra.mxu0 %v1626_v23 }
 0x1cd   : > { %1377 = vmatpush3.bf16.msra.mxu1 %v1627_v24  ;;  %1393 = vmatprep.subr.bf16.mxu0 %v1898_v29 }
 0x1cf   : > { %916 = vmatmul.mubr.bf16.vlgmr.msra.gmra.mrb[0].mxu0 %v623_v27 }
 0x1d0   : > { %957 = vmatmul.mubr.bf16.vlgmr.msra.gmra.mrb[0].mxu1 %v625_v28  ;;  %1394 = vmatpush3.bf16.msra.mxu0 %v1628_v30 }
 0x1d1   : > { %1395 = vmatprep.subr.bf16.mxu0 %v1898_v29  ;;  %1409 = vmatprep.mubr.msk.bf16.mxu0 %vm1899_vm0, %v1898_v29 }
 0x1d4   : > { %1396 = vmatpush3.bf16.msra.mxu0 %v1629_v31 }
 0x1d5   : > { %1397 = vmatprep.subr.bf16.mxu0 %v1898_v29 }
 0x1d8   : > { %1398 = vmatpush3.bf16.msra.mxu0 %v1630_v32 }
 0x1d9   : > { %1399 = vmatprep.subr.bf16.mxu0 %v1898_v29 }
 0x1dc   : > { %1400 = vmatpush3.bf16.msra.mxu0 %v1631_v33 }
 0x1dd   : > { %1401 = vmatprep.subr.bf16.mxu0 %v1898_v29 }
 0x1e0   : > { %1402 = vmatpush3.bf16.msra.mxu0 %v1632_v34 }
 0x1e1   : > { %1403 = vmatprep.subr.bf16.mxu0 %v1898_v29 }
 0x1e4   : > { %1404 = vmatpush3.bf16.msra.mxu0 %v1633_v35 }
 0x1e5   : > { %1405 = vmatprep.subr.bf16.mxu0 %v1898_v29 }
 0x1e8   : > { %1406 = vmatpush3.bf16.msra.mxu0 %v1634_v36 }
 0x1e9   : > { %1407 = vmatprep.subr.bf16.mxu0 %v1898_v29 }
 0x1ec   : > { %1408 = vmatpush3.bf16.msra.mxu0 %v1635_v37 }
 0x2a2   : > { %v1356_v38 = vpop.f32.mrb[0].mxu0 }
 0x2a3   : > { %v1378_v39 = vpop.f32.mrb[0].mxu1  ;;  %v1357_v40 = vpop.f32.mrb[1].mxu0 }
 0x2a4   : > { %v1358_v41 = vadd.f32 %v1357_v40, %v1356_v38  ;;  %v1379_v42 = vpop.f32.mrb[1].mxu1  ;;  %v1359_v43 = vpop.f32.mrb[2].mxu0 }
 0x2a5   : > { %v1380_v44 = vadd.f32 %v1379_v42, %v1378_v39  ;;  %v1381_v45 = vpop.f32.mrb[2].mxu1  ;;  %v1360_v46 = vpop.f32.mrb[3].mxu0 }
 0x2a6   : > { %v1361_v47 = vadd.f32 %v1360_v46, %v1359_v43  ;;  %v1382_v48 = vpop.f32.mrb[3].mxu1 }
 0x2a7   : > { %v959_v49 = vadd.f32 %v1380_v44, %v1358_v41  ;;  %v1383_v50 = vadd.f32 %v1382_v48, %v1381_v45 }
 0x2a9   : > { %v962_v51 = vadd.f32 %v1383_v50, %v1361_v47  ;;  %v965_v52 = vmax.f32 %v959_v49, 0.0 }
 0x2ab   : > { %v966_v53 = vmax.f32 %v962_v51, 0.0 }
 0x2ad   : > { %v967_v54 = vpack.c.bf16 %v966_v53, %v965_v52 }
 0x2af   : > { %1410 = vmatmul.mubr.bf16.vlgmr.msra.gmra.mrb[4].mxu0 %v967_v54 }
 0x381   : > { %1082 = sbr.rel (%p1331_p7) target bundleno = 914 (0x392), region = 60 }
 0x382   : > { %v1068_v56 = vpop.f32.mrb[4].mxu0 }
 0x383   : > { %v1075_v58 = vadd.f32 %v1068_v56, %v968_v55  ;;  %v1411_v59 = vpop.f32.mrb[5].mxu0 }
 0x384   : > { %v1071_v60 = vpop.f32.mrb[6].mxu0 }
 0x385   : > { %1077 = vst [vmem:[#allocation3] sm:$0xff] %v1075_v58  ;;  %v1076_v61 = vadd.f32 %v1071_v60, %v969_v57  ;;  %v1412_v62 = vpop.f32.mrb[7].mxu0 }
 0x387   : > { %1078 = vst [vmem:[#allocation3 + $0x8] sm:$0xff] %v1076_v61 }
 0x38c   : > { %v1085_v0 = vld [vmem:[#allocation3] sm:$0xff] }
 0x38d   : > { %v1087_v2 = vadd.f32 %v1085_v0, %v1083_v63 }
 0x38e   : > { %v1086_v3 = vld [vmem:[#allocation3 + $0x8] sm:$0xff] }
 0x38f   : > { %v1088_v4 = vadd.f32 %v1086_v3, %v1084_v1  ;;  %1089 = vst [vmem:[%s2244_s30] sm:$0xff] %v1087_v2 }
 0x391   : > { %1090 = vst [vmem:[%s2244_s30 + $0x8] sm:$0xff] %v1088_v4 }
 0x392 PF: > { %s1339_s12 = sshll.u32 %s1872_s22, 8  ;;  %s1105_s0 = sshll.u32 %s2244_s30, 4  ;;  %s2301_s0 = int_to_ptr.vmem [resolvable:$true] %s1105_s0 }
 0x393   : > { %s2298_s29 = scalar_lea.hbm %s2370_s4, %s1339_s12  ;;  %s2305_s24 = scalar_lea.sflag [#allocation6], %s257_s23 }
 0x394   : > { %s1754_s11 = scalar_lea.vmem %s2301_s0, 256  ;;  %p2427_p0 = scmp.ne.s32.totalorder %s2412_s14, 0 }
 0x395   : > { %p1755_p11 = scmp.ne.s32.totalorder %s2301_s0, %s1754_s11  ;;  %s1900_s22 = smov [#allocation11]  }
 0x396   : > { %s1758_s8 = sshll.u32 %s1900_s22, 4  ;;  %s1759_s8 = int_to_ptr.vmem [resolvable:$false] %s1758_s8 }
 0x397   : > { %p1756_p13 = pnand %p1755_p11, %p2427_p0  ;;  %s1760_s6 = scalar_lea.vmem %s1759_s8, 512 }
 0x398   : > { %p1761_p12 = scmp.lt.s32.totalorder %s2301_s0, %s1759_s8  ;;  %p1762_p6 = scmp.lt.s32.totalorder %s1760_s6, %s1754_s11 }
 0x399   : > { %p1757_p1 = pneg %p1756_p13 }
 0x39a   : > { %p1763_p10 = por %p1762_p6, %p1761_p12 }
 0x39c   : > { %p1764_p5 = pnand %p1763_p10, %p1757_p1 }
 0x39e   : > { %1767 = shalt.err (!%p1764_p5)
}
 0x39f   : > { %s1768_s26 = scalar_lea.hbm %s2298_s29, 256  ;;  %s1772_s13 = scalar_lea.hbm %s2370_s4, 512 }
 0x3a0   : > { %p1769_p3 = scmp.ne.s32.totalorder %s2298_s29, %s1768_s26  ;;  %p1773_p8 = scmp.lt.u32.totalorder %s2298_s29, %s2370_s4 }
 0x3a1   : > { %p1774_p9 = scmp.lt.u32.totalorder %s1772_s13, %s1768_s26  ;;  %p1776_p11 = scmp.lt.u32.totalorder %s1768_s26, %s2298_s29 }
 0x3a2   : > { %p1770_p4 = pnand %p1769_p3, %p2427_p0 }
 0x3a3   : > { %p1775_p7 = por %p1774_p9, %p1773_p8 }
 0x3a4   : > { %p1771_p2 = pneg %p1770_p4 }
 0x3a5   : > { %p1777_p13 = por %p1776_p11, %p1775_p7 }
 0x3a7   : > { %p1778_p1 = pnand %p1777_p13, %p1771_p2 }
 0x3a9   : > { %1781 = shalt.err (!%p1778_p1)
}
 0x3aa   : > { %s1901_s20 = smov 128   ;;  %s1902_s28 = smov 8  }
 0x3ab   : > { %1423 = dma.vmem_to_hbm [thread:$0]  (%p2427_p0), %s2301_s0, 256, %s2298_s29, %s2305_s24, %s1901_s20, %s1901_s20, %s1902_s28  }
 0x3ac PF: > { %p1446_p12 = scmp.ge.s32.totalorder %s1884_s25, 2  ;;  %s1120_s7 = sand.u32 1, %s1856_s18  }
 0x3ad   : > { %p2428_p6 = scmp.ne.s32.totalorder %s2413_s15, 0  ;;  %s1121_s10 = scalar_lea.sflag [#allocation6], %s1120_s7 }
 0x3af   : > { %p1440_p10 = pnand %p1446_p12, %p2428_p6 }
 0x3b1   : > { %1839 = dma.done.wait (!%p1440_p10), %s1121_s10, 256  }
 0x3b2   : > { %1841 = vsyncadd (!%p1440_p10), %s1121_s10, 4294967040  ;;  %s21_s25 = sadd.s32 1, %s1884_s25   ;;  %s2429_s9 = sld [smem:[#allocation16_spill]] }
 0x3b3   : > { %p18_p5 = scmp.ge.s32.totalorder %s21_s25, 10   ;;  %s2430_s17 = sld [smem:[#allocation23_spill]] }
 0x3b4   : > { %s2431_s14 = sld [smem:[#allocation17_spill]]  ;;  %s2432_s20 = sld [smem:[#allocation22_spill]] }
 0x3b5   : > { %s2433_s21 = sld [smem:[#allocation18_spill]]  ;;  %s2434_s22 = sld [smem:[#allocation19_spill]] }
 0x3b6   : > { %s2435_s23 = sld [smem:[#allocation20_spill]]  ;;  %s2436_s24 = sld [smem:[#allocation21_spill]] }
 0x3b7   : > { %s2437_s15 = smov %s1848_s16  ;;  %s2439_s18 = smov %s1860_s19 }
 0x3b8   : > { %s2438_s16 = smov %s2429_s9  ;;  %20 = sbr.rel (!%p18_p5) target bundleno = 13 (0xd), region = 115 }
 0x3ba   : > { %s2440_s19 = smov %s2431_s14 }
 0x3bf   :  { %1126 = vsyncpa [#allocation5], 1 }
 0x3c0   :  { %1128 = vsyncpa [#allocation5 + $0x1], 1 }
 0x3c1   :  { %1129 = vsyncpa [#allocation8], 1 }
 0x3c2   :  { %1130 = vsyncpa [#allocation6], 1 }
 0x3c3   :  { %1132 = vsyncpa [#allocation6 + $0x1], 1 }

</bundles_post_ra>
